<compile_context>
chip_gen: v7x
topology: tpu7x:2x2x1
jax: 0.10.0
libtpu: 0.0.40
codegen_flags: <defaults>
</compile_context>

<pallas_src>
import jax
import jax.numpy as jnp
import numpy as np
from jax.experimental import pallas as pl
from jax.experimental.pallas import tpu as pltpu


def _ddm_loss_kernel(t_st_ref,                      # SMEM prefetch (B, 2): [t, sqrt(t)]
                     x0_ref, noise_ref,             # (1, C, tile_hw) blocks (input dtype)
                     w1t_ref,                       # (hd, C)  bf16
                     w2pt_ref, w2et_ref,            # (C, hd)  bf16
                     wt_ref, b1_ref,                # (hd, 1)  f32
                     b2p_ref, b2e_ref,              # (C, 1)   f32
                     out_ref,                       # (1, 1, 8, 128) per-(b, jo) partial
                     acc_ref, bias1_ref):           # VMEM (2C, 1) f32, (hd, 1) f32
    C = x0_ref.shape[1]
    b = pl.program_id(0)
    ji = pl.program_id(2)

    t = t_st_ref[b, 0]          # scalar per-batch time
    sqrt_t = t_st_ref[b, 1]     # precomputed sqrt(t) (no per-tile EUP sqrt)

    @pl.when(ji == 0)
    def _init():
        acc_ref[...] = jnp.zeros_like(acc_ref)
        # time-conditioning bias only depends on b: hoist out of the inner loop
        bias1_ref[...] = t * wt_ref[...] + b1_ref[...]

    x0 = x0_ref[0].astype(jnp.float32)        # (C, tile_hw)  spatial on lanes
    noise = noise_ref[0].astype(jnp.float32)  # (C, tile_hw)

    # ---- get_phi / get_H_t / get_noisy_x (f32 VPU math) ----
    phi = -x0                                 # get_phi(x_0) = (-x_0,)
    x_t = x0 + t * phi + sqrt_t * noise       # x_t = x_0 + H_t(t, phi) + sqrt(t)*noise

    # ---- net(x_t, t) -> (phi_theta, eps_theta): per-pixel MLP (1x1 convs) ----
    # MXU in bf16 with f32 accumulation (halves operand vreg/VMEM footprint).
    h = jnp.dot(w1t_ref[...], x_t.astype(jnp.bfloat16),
                preferred_element_type=jnp.float32)            # (hd, tile_hw) f32
    h = jnp.maximum(h + bias1_ref[...], 0.0)                   # time cond + bias + ReLU
    h_bf = h.astype(jnp.bfloat16)

    pred_phi = jnp.dot(w2pt_ref[...], h_bf,
                       preferred_element_type=jnp.float32) + b2p_ref[...]   # (C, tile_hw)
    pred_eps = jnp.dot(w2et_ref[...], h_bf,
                       preferred_element_type=jnp.float32) + b2e_ref[...]   # (C, tile_hw)

    # ---- squared-error partial sums: per-step lane reduce -> tiny accumulator ----
    acc_ref[:C, :] += jnp.sum((phi - pred_phi) ** 2, axis=-1, keepdims=True)
    acc_ref[C:, :] += jnp.sum((noise - pred_eps) ** 2, axis=-1, keepdims=True)

    @pl.when(ji == pl.num_programs(2) - 1)
    def _finalize():
        # One tiny reduce + lane-dense (8,128) write per (batch, outer-chunk).
        out_ref[...] = jnp.full(out_ref.shape, jnp.sum(acc_ref[...]), jnp.float32)


def _practical_vmem_bytes():
    """Generation-aware practical VMEM ceiling (~3/4 of physical)."""
    cap = 64 << 20                               # conservative default (v7x physical)
    try:
        info = pltpu.get_tpu_info()
        for name in ("vmem_capacity_bytes", "vmem_bytes", "vmem_size_bytes"):
            val = getattr(info, name, None)
            if val:
                cap = int(val)
                break
    except Exception:
        pass
    practical = (cap * 3) // 4                   # 48 MiB (v7x) / 96 MiB (v5e, v6e)
    return int(min(max(practical, 32 << 20), 100 << 20))


def _pick_tile_hw(HW, C, hd, in_itemsize, budget_bytes):
    """Largest spatial tile (multiple of 128 dividing HW) that fits the budget."""
    if HW % 128 != 0:
        return HW                                # single full-extent block
    Cp = max(8, -(-C // 8) * 8)                  # sublane-padded channels
    hdp = max(8, -(-hd // 8) * 8)
    per_col = (2 * 2 * Cp * in_itemsize          # double-buffered x0 + noise blocks
               + 8 * Cp * 4                      # x_t / phi / pred / sq f32 temps
               + 8 * hdp * 4)                    # h f32 + bf16 (generous)
    n128 = HW // 128
    max_t128 = max(1, min(n128, budget_bytes // (per_col * 128)))
    t128 = 1
    for d in range(1, max_t128 + 1):
        if n128 % d == 0:
            t128 = d
    return t128 * 128


def ddm_loss_pallas(x0_nchw, noise_nchw, t_b, params):
    """x0_nchw, noise_nchw: [B, C, H, W]; t_b: [B]. Returns scalar loss."""
    B, C, H, W = x0_nchw.shape
    HW = H * W
    numel = B * C * HW                           # denominator of both MSE terms

    w1, wt, b1, w2p, b2p, w2e, b2e = params
    hd = w1.shape[1]

    vmem_limit = _practical_vmem_bytes()
    tile_hw = _pick_tile_hw(HW, C, hd, x0_nchw.dtype.itemsize, vmem_limit // 2)
    n_blocks = HW // tile_hw

    # Second parallel axis over spatial chunks so v7x's two TCs stay busy at B==1.
    n_outer = 1
    if B == 1 and n_blocks > 1:
        for d in (2, 4):
            if n_blocks % d == 0:
                n_outer = d
                break
    n_inner = n_blocks // n_outer

    # Keep NCHW; merge spatial dims -> [B, C, H*W]; spatial lands on lanes.
    # No dtype cast here: inputs are DMA'd in their native dtype (no extra HBM pass).
    x0_3d = x0_nchw.reshape(B, C, HW)
    noise_3d = noise_nchw.reshape(B, C, HW)

    t_f32 = t_b.astype(jnp.float32)
    t_st = jnp.stack([t_f32, jnp.sqrt(t_f32)], axis=1)          # (B, 2) -> SMEM prefetch

    # Weights: bf16 MXU operands (tiny, resident); biases stay f32 columns.
    w1t = jnp.asarray(w1, jnp.bfloat16).T                       # (hd, C)
    w2pt = jnp.asarray(w2p, jnp.bfloat16).T                     # (C, hd)
    w2et = jnp.asarray(w2e, jnp.bfloat16).T                     # (C, hd)
    wt_col = jnp.asarray(wt, jnp.float32).T                     # (hd, 1)
    b1_col = jnp.asarray(b1, jnp.float32).T                     # (hd, 1)
    b2p_col = jnp.asarray(b2p, jnp.float32).T                   # (C, 1)
    b2e_col = jnp.asarray(b2e, jnp.float32).T                   # (C, 1)

    in_bytes = 2 * B * C * HW * x0_nchw.dtype.itemsize
    w_bytes = (2 * (w1t.size + w2pt.size + w2et.size)
               + 4 * (wt_col.size + b1_col.size + b2p_col.size + b2e_col.size))
    out_bytes = B * n_outer * 8 * 128 * 4
    flops = 2 * B * HW * 3 * C * hd + 15 * B * C * HW
    ce = pl.CostEstimate(flops=int(flops), transcendentals=0,
                         bytes_accessed=int(in_bytes + w_bytes + out_bytes))

    partial = pl.pallas_call(
        _ddm_loss_kernel,
        out_shape=jax.ShapeDtypeStruct((B, n_outer, 8, 128), jnp.float32),
        grid_spec=pltpu.PrefetchScalarGridSpec(
            num_scalar_prefetch=1,
            grid=(B, n_outer, n_inner),
            in_specs=[
                pl.BlockSpec((1, C, tile_hw),
                             lambda b, jo, ji, ts: (b, 0, jo * n_inner + ji)),  # x0
                pl.BlockSpec((1, C, tile_hw),
                             lambda b, jo, ji, ts: (b, 0, jo * n_inner + ji)),  # noise
                pl.BlockSpec((hd, C), lambda b, jo, ji, ts: (0, 0)),            # W1^T
                pl.BlockSpec((C, hd), lambda b, jo, ji, ts: (0, 0)),            # W2p^T
                pl.BlockSpec((C, hd), lambda b, jo, ji, ts: (0, 0)),            # W2e^T
                pl.BlockSpec((hd, 1), lambda b, jo, ji, ts: (0, 0)),            # Wt
                pl.BlockSpec((hd, 1), lambda b, jo, ji, ts: (0, 0)),            # b1
                pl.BlockSpec((C, 1), lambda b, jo, ji, ts: (0, 0)),             # b2p
                pl.BlockSpec((C, 1), lambda b, jo, ji, ts: (0, 0)),             # b2e
            ],
            out_specs=pl.BlockSpec((1, 1, 8, 128),
                                   lambda b, jo, ji, ts: (b, jo, 0, 0)),
            scratch_shapes=[pltpu.VMEM((2 * C, 1), jnp.float32),   # sq partial sums
                            pltpu.VMEM((hd, 1), jnp.float32)],     # hoisted t*wt + b1
        ),
        compiler_params=pltpu.CompilerParams(
            dimension_semantics=("parallel", "parallel", "arbitrary"),
            vmem_limit_bytes=int(vmem_limit)),
        cost_estimate=ce,
    )(t_st, x0_3d, noise_3d, w1t, w2pt, w2et, wt_col, b1_col, b2p_col, b2e_col)

    # Sum per-(batch, chunk) partials; divide once by numel (== mse_phi + mse_eps).
    return jnp.sum(partial[:, :, 0, 0]) * jnp.float32(1.0 / numel)


def ddm_loss_ref(x0_nchw, noise_nchw, t_b, params):
    """Pure-JAX reference mirroring DDM_base.forward semantics (token layout).

    Element-wise math in f32; matmul operands in bf16 with f32 accumulation,
    matching the kernel's MXU precision.
    """
    B, C, H, W = x0_nchw.shape
    x0 = jnp.transpose(x0_nchw, (0, 2, 3, 1)).reshape(-1, C).astype(jnp.float32)
    noise = jnp.transpose(noise_nchw, (0, 2, 3, 1)).reshape(-1, C).astype(jnp.float32)
    t = jnp.repeat(t_b.astype(jnp.float32), H * W).reshape(-1, 1)
    w1, wt, b1, w2p, b2p, w2e, b2e = params
    phi = -x0
    x_t = x0 + t * phi + jnp.sqrt(t) * noise
    h = jnp.dot(x_t.astype(jnp.bfloat16), jnp.asarray(w1, jnp.bfloat16),
                preferred_element_type=jnp.float32)
    h = jnp.maximum(h + t * wt + b1, 0.0)
    h_bf = h.astype(jnp.bfloat16)
    phi_theta = jnp.dot(h_bf, jnp.asarray(w2p, jnp.bfloat16),
                        preferred_element_type=jnp.float32) + b2p
    eps_theta = jnp.dot(h_bf, jnp.asarray(w2e, jnp.bfloat16),
                        preferred_element_type=jnp.float32) + b2e
    return jnp.mean((phi - phi_theta) ** 2) + jnp.mean((noise - eps_theta) ** 2)


def make_params(key, c, hidden):
    ks = jax.random.split(key, 7)
    w1 = jax.random.normal(ks[0], (c, hidden), jnp.float32) / np.sqrt(c)
    wt = jax.random.normal(ks[1], (1, hidden), jnp.float32)
    b1 = 0.1 * jax.random.normal(ks[2], (1, hidden), jnp.float32)
    w2p = jax.random.normal(ks[3], (hidden, c), jnp.float32) / np.sqrt(hidden)
    b2p = 0.1 * jax.random.normal(ks[4], (1, c), jnp.float32)
    w2e = jax.random.normal(ks[5], (hidden, c), jnp.float32) / np.sqrt(hidden)
    b2e = 0.1 * jax.random.normal(ks[6], (1, c), jnp.float32)
    return (w1, wt, b1, w2p, b2p, w2e, b2e)


if __name__ == "__main__":
    B, C, H, W = 2, 4, 16, 16
    HIDDEN = 32

    key = jax.random.PRNGKey(0)
    k_x, k_n, k_t, k_p = jax.random.split(key, 4)

    x0 = jax.random.normal(k_x, (B, C, H, W), jnp.float32)       # x_0  (NCHW)
    noise = jax.random.normal(k_n, (B, C, H, W), jnp.float32)    # torch.randn_like(x_0)
    t = jax.random.uniform(k_t, (B,), jnp.float32,
                           minval=1e-4, maxval=1.0)               # torch.rand((B,))
    params = make_params(k_p, C, HIDDEN)

    loss = jax.block_until_ready(ddm_loss_pallas(x0, noise, t, params))
    loss_ref = jax.block_until_ready(ddm_loss_ref(x0, noise, t, params))

    np.testing.assert_allclose(np.asarray(loss), np.asarray(loss_ref),
                               rtol=2e-4, atol=1e-5)
    print("KERNEL_OK")
</pallas_src>

<mosaic_0001>
module attributes {stable_mosaic.version = 11 : i64} {
  func.func @_ddm_loss_kernel(%arg0: i32, %arg1: i32, %arg2: i32, %arg3: memref<2x2xf32, #tpu.memory_space<smem>>, %arg4: memref<1x4x256xf32, #tpu.memory_space<vmem>>, %arg5: memref<1x4x256xf32, #tpu.memory_space<vmem>>, %arg6: memref<32x4xbf16, #tpu.memory_space<vmem>>, %arg7: memref<4x32xbf16, #tpu.memory_space<vmem>>, %arg8: memref<4x32xbf16, #tpu.memory_space<vmem>>, %arg9: memref<32x1xf32, #tpu.memory_space<vmem>>, %arg10: memref<32x1xf32, #tpu.memory_space<vmem>>, %arg11: memref<4x1xf32, #tpu.memory_space<vmem>>, %arg12: memref<4x1xf32, #tpu.memory_space<vmem>>, %arg13: memref<1x1x8x128xf32, #tpu.memory_space<vmem>>, %arg14: memref<8x1xf32, #tpu.memory_space<vmem>>, %arg15: memref<32x1xf32, #tpu.memory_space<vmem>>) attributes {dimension_semantics = [#tpu.dimension_semantics<parallel>, #tpu.dimension_semantics<parallel>, #tpu.dimension_semantics<arbitrary>], iteration_bounds = array<i64: 2, 1, 1>, scalar_prefetch = 1 : i64, scratch_operands = 2 : i64, tpu.core_type = #tpu.core_type<tc>, window_params = [{transform_indices = @transform_0, window_bounds = array<i64: 1, 4, 256>}, {transform_indices = @transform_1, window_bounds = array<i64: 1, 4, 256>}, {pipeline_mode = #tpu.pipeline_mode<synchronous>, transform_indices = @transform_2, window_bounds = array<i64: 32, 4>}, {pipeline_mode = #tpu.pipeline_mode<synchronous>, transform_indices = @transform_3, window_bounds = array<i64: 4, 32>}, {pipeline_mode = #tpu.pipeline_mode<synchronous>, transform_indices = @transform_4, window_bounds = array<i64: 4, 32>}, {pipeline_mode = #tpu.pipeline_mode<synchronous>, transform_indices = @transform_5, window_bounds = array<i64: 32, 1>}, {pipeline_mode = #tpu.pipeline_mode<synchronous>, transform_indices = @transform_6, window_bounds = array<i64: 32, 1>}, {pipeline_mode = #tpu.pipeline_mode<synchronous>, transform_indices = @transform_7, window_bounds = array<i64: 4, 1>}, {pipeline_mode = #tpu.pipeline_mode<synchronous>, transform_indices = @transform_8, window_bounds = array<i64: 4, 1>}, {transform_indices = @transform_9, window_bounds = array<i64: 1, 1, 8, 128>}]} {
    %0 = arith.index_cast %arg0 : i32 to index
    %c0 = arith.constant 0 : index
    %1 = memref.load %arg3[%0, %c0] : memref<2x2xf32, #tpu.memory_space<smem>>
    %2 = arith.index_cast %arg0 : i32 to index
    %c1 = arith.constant 1 : index
    %3 = memref.load %arg3[%2, %c1] : memref<2x2xf32, #tpu.memory_space<smem>>
    %c0_i32 = arith.constant 0 : i32
    %4 = arith.cmpi eq, %arg2, %c0_i32 : i32
    %5 = arith.extui %4 : i1 to i32
    %c0_i32_0 = arith.constant 0 : i32
    %6 = arith.cmpi ne, %5, %c0_i32_0 : i32
    scf.if %6 {
      %cst_34 = arith.constant 0.000000e+00 : f32
      %55 = vector.broadcast %cst_34 : f32 to vector<8x1xf32>
      %c0_35 = arith.constant 0 : index
      %c0_36 = arith.constant 0 : index
      %56 = vector.load %arg14[%c0_35, %c0_36] : memref<8x1xf32, #tpu.memory_space<vmem>>, vector<8x1xf32>
      tpu.vector_store %arg14[%c0_35, %c0_36], %55 {strides = array<i32>} : memref<8x1xf32, #tpu.memory_space<vmem>>, vector<8x1xf32>,
      %c0_37 = arith.constant 0 : index
      %c0_38 = arith.constant 0 : index
      %57 = vector.load %arg9[%c0_37, %c0_38] : memref<32x1xf32, #tpu.memory_space<vmem>>, vector<32x1xf32>
      %58 = vector.broadcast %1 : f32 to vector<32x1xf32>
      %59 = arith.mulf %58, %57 : vector<32x1xf32>
      %c0_39 = arith.constant 0 : index
      %c0_40 = arith.constant 0 : index
      %60 = vector.load %arg10[%c0_39, %c0_40] : memref<32x1xf32, #tpu.memory_space<vmem>>, vector<32x1xf32>
      %61 = arith.addf %59, %60 : vector<32x1xf32>
      %c0_41 = arith.constant 0 : index
      %c0_42 = arith.constant 0 : index
      %62 = vector.load %arg15[%c0_41, %c0_42] : memref<32x1xf32, #tpu.memory_space<vmem>>, vector<32x1xf32>
      tpu.vector_store %arg15[%c0_41, %c0_42], %61 {strides = array<i32>} : memref<32x1xf32, #tpu.memory_space<vmem>>, vector<32x1xf32>,
    } else {
    }
    %c0_1 = arith.constant 0 : index
    %c0_2 = arith.constant 0 : index
    %c0_3 = arith.constant 0 : index
    %7 = vector.load %arg4[%c0_1, %c0_2, %c0_3] : memref<1x4x256xf32, #tpu.memory_space<vmem>>, vector<1x4x256xf32>
    %8 = vector.shape_cast %7 : vector<1x4x256xf32> to vector<4x256xf32>
    %c0_4 = arith.constant 0 : index
    %c0_5 = arith.constant 0 : index
    %c0_6 = arith.constant 0 : index
    %9 = vector.load %arg5[%c0_4, %c0_5, %c0_6] : memref<1x4x256xf32, #tpu.memory_space<vmem>>, vector<1x4x256xf32>
    %10 = vector.shape_cast %9 : vector<1x4x256xf32> to vector<4x256xf32>
    %cst = arith.constant 0.000000e+00 : f32
    %11 = vector.broadcast %cst : f32 to vector<4x256xf32>
    %12 = arith.subf %11, %8 : vector<4x256xf32>
    %13 = vector.broadcast %1 : f32 to vector<4x256xf32>
    %14 = arith.mulf %13, %12 : vector<4x256xf32>
    %15 = arith.addf %8, %14 : vector<4x256xf32>
    %16 = vector.broadcast %3 : f32 to vector<4x256xf32>
    %17 = arith.mulf %16, %10 : vector<4x256xf32>
    %18 = arith.addf %15, %17 : vector<4x256xf32>
    %c0_7 = arith.constant 0 : index
    %c0_8 = arith.constant 0 : index
    %19 = vector.load %arg6[%c0_7, %c0_8] : memref<32x4xbf16, #tpu.memory_space<vmem>>, vector<32x4xbf16>
    %20 = arith.truncf %18 : vector<4x256xf32> to vector<4x256xbf16>
    %cst_9 = arith.constant dense<0.000000e+00> : vector<32x256xf32>
    %21 = tpu.matmul %19, %20, %cst_9 {dimension_numbers = #tpu.dot_dimension_numbers<[1], [0], [0], [1], [0, 0, 1, 1], [], []>} : vector<32x4xbf16>, vector<4x256xbf16>, vector<32x256xf32> -> vector<32x256xf32>
    %c0_10 = arith.constant 0 : index
    %c0_11 = arith.constant 0 : index
    %22 = vector.load %arg15[%c0_10, %c0_11] : memref<32x1xf32, #tpu.memory_space<vmem>>, vector<32x1xf32>
    %23 = vector.broadcast %22 : vector<32x1xf32> to vector<32x256xf32>
    %24 = arith.addf %21, %23 : vector<32x256xf32>
    %cst_12 = arith.constant 0.000000e+00 : f32
    %25 = vector.broadcast %cst_12 : f32 to vector<32x256xf32>
    %26 = arith.maximumf %24, %25 : vector<32x256xf32>
    %27 = arith.truncf %26 : vector<32x256xf32> to vector<32x256xbf16>
    %c0_13 = arith.constant 0 : index
    %c0_14 = arith.constant 0 : index
    %28 = vector.load %arg7[%c0_13, %c0_14] : memref<4x32xbf16, #tpu.memory_space<vmem>>, vector<4x32xbf16>
    %cst_15 = arith.constant dense<0.000000e+00> : vector<4x256xf32>
    %29 = tpu.matmul %28, %27, %cst_15 {dimension_numbers = #tpu.dot_dimension_numbers<[1], [0], [0], [1], [0, 0, 1, 1], [], []>} : vector<4x32xbf16>, vector<32x256xbf16>, vector<4x256xf32> -> vector<4x256xf32>
    %c0_16 = arith.constant 0 : index
    %c0_17 = arith.constant 0 : index
    %30 = vector.load %arg11[%c0_16, %c0_17] : memref<4x1xf32, #tpu.memory_space<vmem>>, vector<4x1xf32>
    %31 = vector.broadcast %30 : vector<4x1xf32> to vector<4x256xf32>
    %32 = arith.addf %29, %31 : vector<4x256xf32>
    %c0_18 = arith.constant 0 : index
    %c0_19 = arith.constant 0 : index
    %33 = vector.load %arg8[%c0_18, %c0_19] : memref<4x32xbf16, #tpu.memory_space<vmem>>, vector<4x32xbf16>
    %cst_20 = arith.constant dense<0.000000e+00> : vector<4x256xf32>
    %34 = tpu.matmul %33, %27, %cst_20 {dimension_numbers = #tpu.dot_dimension_numbers<[1], [0], [0], [1], [0, 0, 1, 1], [], []>} : vector<4x32xbf16>, vector<32x256xbf16>, vector<4x256xf32> -> vector<4x256xf32>
    %c0_21 = arith.constant 0 : index
    %c0_22 = arith.constant 0 : index
    %35 = vector.load %arg12[%c0_21, %c0_22] : memref<4x1xf32, #tpu.memory_space<vmem>>, vector<4x1xf32>
    %36 = vector.broadcast %35 : vector<4x1xf32> to vector<4x256xf32>
    %37 = arith.addf %34, %36 : vector<4x256xf32>
    %c0_23 = arith.constant 0 : index
    %c0_24 = arith.constant 0 : index
    %38 = vector.load %arg14[%c0_23, %c0_24] : memref<8x1xf32, #tpu.memory_space<vmem>>, vector<4x1xf32>
    %39 = arith.subf %12, %32 : vector<4x256xf32>
    %40 = arith.mulf %39, %39 : vector<4x256xf32>
    %cst_25 = arith.constant dense<0.000000e+00> : vector<4xf32>
    %41 = vector.multi_reduction <add>, %40, %cst_25 [1] : vector<4x256xf32> to vector<4xf32>
    %42 = vector.shape_cast %41 : vector<4xf32> to vector<4x1xf32>
    %43 = arith.addf %38, %42 : vector<4x1xf32>
    %c0_26 = arith.constant 0 : index
    %c0_27 = arith.constant 0 : index
    %44 = vector.load %arg14[%c0_26, %c0_27] : memref<8x1xf32, #tpu.memory_space<vmem>>, vector<4x1xf32>
    tpu.vector_store %arg14[%c0_26, %c0_27], %43 {strides = array<i32>} : memref<8x1xf32, #tpu.memory_space<vmem>>, vector<4x1xf32>,
    %c4 = arith.constant 4 : index
    %c0_28 = arith.constant 0 : index
    %45 = vector.load %arg14[%c4, %c0_28] : memref<8x1xf32, #tpu.memory_space<vmem>>, vector<4x1xf32>
    %46 = arith.subf %10, %37 : vector<4x256xf32>
    %47 = arith.mulf %46, %46 : vector<4x256xf32>
    %cst_29 = arith.constant dense<0.000000e+00> : vector<4xf32>
    %48 = vector.multi_reduction <add>, %47, %cst_29 [1] : vector<4x256xf32> to vector<4xf32>
    %49 = vector.shape_cast %48 : vector<4xf32> to vector<4x1xf32>
    %50 = arith.addf %45, %49 : vector<4x1xf32>
    %c4_30 = arith.constant 4 : index
    %c0_31 = arith.constant 0 : index
    %51 = vector.load %arg14[%c4_30, %c0_31] : memref<8x1xf32, #tpu.memory_space<vmem>>, vector<4x1xf32>
    tpu.vector_store %arg14[%c4_30, %c0_31], %50 {strides = array<i32>} : memref<8x1xf32, #tpu.memory_space<vmem>>, vector<4x1xf32>,
    %c0_i32_32 = arith.constant 0 : i32
    %52 = arith.cmpi eq, %arg2, %c0_i32_32 : i32
    %53 = arith.extui %52 : i1 to i32
    %c0_i32_33 = arith.constant 0 : i32
    %54 = arith.cmpi ne, %53, %c0_i32_33 : i32
    scf.if %54 {
      %c0_34 = arith.constant 0 : index
      %c0_35 = arith.constant 0 : index
      %55 = vector.load %arg14[%c0_34, %c0_35] : memref<8x1xf32, #tpu.memory_space<vmem>>, vector<8x1xf32>
      %56 = vector.shape_cast %55 : vector<8x1xf32> to vector<1x8x1xf32>
      %cst_36 = arith.constant dense<0.000000e+00> : vector<1xf32>
      %57 = vector.multi_reduction <add>, %56, %cst_36 [1, 2] : vector<1x8x1xf32> to vector<1xf32>
      %58 = vector.shape_cast %57 : vector<1xf32> to vector<1x1x1xf32>
      %59 = vector.extract %58[0, 0, 0] : f32 from vector<1x1x1xf32>
      %60 = vector.broadcast %59 : f32 to vector<1x1x8x128xf32>
      %c0_37 = arith.constant 0 : index
      %c0_38 = arith.constant 0 : index
      %c0_39 = arith.constant 0 : index
      %c0_40 = arith.constant 0 : index
      %61 = vector.load %arg13[%c0_37, %c0_38, %c0_39, %c0_40] : memref<1x1x8x128xf32, #tpu.memory_space<vmem>>, vector<1x1x8x128xf32>
      tpu.vector_store %arg13[%c0_37, %c0_38, %c0_39, %c0_40], %60 {strides = array<i32>} : memref<1x1x8x128xf32, #tpu.memory_space<vmem>>, vector<1x1x8x128xf32>,
    } else {
    }
    return
  }
  func.func @transform_0(%arg0: i32, %arg1: i32, %arg2: i32, %arg3: memref<2x2xf32, #tpu.memory_space<smem>>) -> (i32, i32, i32) {
    %c1_i32 = arith.constant 1 : i32
    %0 = arith.muli %arg1, %c1_i32 : i32
    %1 = arith.addi %0, %arg2 : i32
    %c0_i32 = arith.constant 0 : i32
    %c0_i32_0 = arith.constant 0 : i32
    return %arg0, %c0_i32, %1 : i32, i32, i32
  }
  func.func @transform_1(%arg0: i32, %arg1: i32, %arg2: i32, %arg3: memref<2x2xf32, #tpu.memory_space<smem>>) -> (i32, i32, i32) {
    %c1_i32 = arith.constant 1 : i32
    %0 = arith.muli %arg1, %c1_i32 : i32
    %1 = arith.addi %0, %arg2 : i32
    %c0_i32 = arith.constant 0 : i32
    %c0_i32_0 = arith.constant 0 : i32
    return %arg0, %c0_i32, %1 : i32, i32, i32
  }
  func.func @transform_2(%arg0: i32, %arg1: i32, %arg2: i32, %arg3: memref<2x2xf32, #tpu.memory_space<smem>>) -> (i32, i32) {
    %c0_i32 = arith.constant 0 : i32
    %c0_i32_0 = arith.constant 0 : i32
    %c0_i32_1 = arith.constant 0 : i32
    return %c0_i32, %c0_i32_0 : i32, i32
  }
  func.func @transform_3(%arg0: i32, %arg1: i32, %arg2: i32, %arg3: memref<2x2xf32, #tpu.memory_space<smem>>) -> (i32, i32) {
    %c0_i32 = arith.constant 0 : i32
    %c0_i32_0 = arith.constant 0 : i32
    %c0_i32_1 = arith.constant 0 : i32
    return %c0_i32, %c0_i32_0 : i32, i32
  }
  func.func @transform_4(%arg0: i32, %arg1: i32, %arg2: i32, %arg3: memref<2x2xf32, #tpu.memory_space<smem>>) -> (i32, i32) {
    %c0_i32 = arith.constant 0 : i32
    %c0_i32_0 = arith.constant 0 : i32
    %c0_i32_1 = arith.constant 0 : i32
    return %c0_i32, %c0_i32_0 : i32, i32
  }
  func.func @transform_5(%arg0: i32, %arg1: i32, %arg2: i32, %arg3: memref<2x2xf32, #tpu.memory_space<smem>>) -> (i32, i32) {
    %c0_i32 = arith.constant 0 : i32
    %c0_i32_0 = arith.constant 0 : i32
    %c0_i32_1 = arith.constant 0 : i32
    return %c0_i32, %c0_i32_0 : i32, i32
  }
  func.func @transform_6(%arg0: i32, %arg1: i32, %arg2: i32, %arg3: memref<2x2xf32, #tpu.memory_space<smem>>) -> (i32, i32) {
    %c0_i32 = arith.constant 0 : i32
    %c0_i32_0 = arith.constant 0 : i32
    %c0_i32_1 = arith.constant 0 : i32
    return %c0_i32, %c0_i32_0 : i32, i32
  }
  func.func @transform_7(%arg0: i32, %arg1: i32, %arg2: i32, %arg3: memref<2x2xf32, #tpu.memory_space<smem>>) -> (i32, i32) {
    %c0_i32 = arith.constant 0 : i32
    %c0_i32_0 = arith.constant 0 : i32
    %c0_i32_1 = arith.constant 0 : i32
    return %c0_i32, %c0_i32_0 : i32, i32
  }
  func.func @transform_8(%arg0: i32, %arg1: i32, %arg2: i32, %arg3: memref<2x2xf32, #tpu.memory_space<smem>>) -> (i32, i32) {
    %c0_i32 = arith.constant 0 : i32
    %c0_i32_0 = arith.constant 0 : i32
    %c0_i32_1 = arith.constant 0 : i32
    return %c0_i32, %c0_i32_0 : i32, i32
  }
  func.func @transform_9(%arg0: i32, %arg1: i32, %arg2: i32, %arg3: memref<2x2xf32, #tpu.memory_space<smem>>) -> (i32, i32, i32, i32) {
    %c0_i32 = arith.constant 0 : i32
    %c0_i32_0 = arith.constant 0 : i32
    %c0_i32_1 = arith.constant 0 : i32
    return %arg0, %arg1, %c0_i32, %c0_i32_0 : i32, i32, i32, i32
  }
}

</mosaic_0001>

<bundles_post_ra>
// kernel: tpu_custom_call.1
= control target key start
LH: loop header
LB: loop body
LE: loop exit
PB: predicated region body
PF: predicated region fallthrough
CT: control target
= control target key end

     0   :  { %s1282_s0 = inlined_call_operand.vmem [shape: f32[2,2], index: 0, kind: input, shape index: {}]   ;;  %s1283_s1 = inlined_call_operand.vmem [shape: f32[2,4,256], index: 1, kind: input, shape index: {}]   ;;  %s1284_s2 = inlined_call_operand.vmem [shape: f32[2,4,256], index: 2, kind: input, shape index: {}]   ;;  %s1285_s3 = inlined_call_operand.vmem [shape: bf16[32,4], index: 3, kind: input, shape index: {}]   ;;  %s1286_s4 = inlined_call_operand.vmem [shape: bf16[4,32], index: 4, kind: input, shape index: {}]   ;;  %s1287_s5 = inlined_call_operand.vmem [shape: bf16[4,32], index: 5, kind: input, shape index: {}]   ;;  %s1288_s6 = inlined_call_operand.vmem [shape: f32[32,1], index: 6, kind: input, shape index: {}]   ;;  %s1289_s7 = inlined_call_operand.vmem [shape: f32[32,1], index: 7, kind: input, shape index: {}]   ;;  %s1290_s8 = inlined_call_operand.vmem [shape: f32[4,1], index: 8, kind: input, shape index: {}]   ;;  %s1291_s9 = inlined_call_operand.vmem [shape: f32[4,1], index: 9, kind: input, shape index: {}]   ;;  %s1292_s10 = inlined_call_operand.hbm [shape: f32[2,1,8,128], index: 10, kind: output, shape index: {}]  }
   0x1   :  { %s15_s15 = sshll.u32 %s1282_s0, 4  ;;  %s16_s15 = int_to_ptr.vmem [resolvable:$true] %s15_s15 }
   0x2   :  { %s942_s16 = scalar_lea.vmem %s16_s15, 32  ;;  %p947_p1 = scmp.lt.s32.totalorder %s16_s15, %s16_s15 }
   0x3   :  { %p943_p0 = scmp.ne.s32.totalorder %s16_s15, %s942_s16  ;;  %p948_p2 = scmp.lt.s32.totalorder %s942_s16, %s942_s16 }
   0x5   :  { %p949_p3 = por %p948_p2, %p947_p1 }
   0x7   :  { %p950_p4 = pnand %p949_p3, %p943_p0 }
   0x9   :  { %953 = shalt.err (!%p950_p4)  }
   0xa   :  { %s1036_s17 = smov [#allocation5]  }
   0xb   :  { %18 = dma.vmem_to_smem %s16_s15, 32, %s1036_s17, [#allocation4] }
   0xc   :  { %1006 = dma.done.wait [#allocation4], 32 }
   0xd   :  { %1007 = vsyncadd [#allocation4], 4294967264 }
   0xe   :  { %20 = sfence }
   0xf   :  { %21 = vsyncpa [#allocation7], 0 }
  0x10   :  { %23 = vsyncpa [#allocation7 + $0x1], 0  ;;  %s1098_s18 = smov 0   ;;  %s1100_s19 = smov 0  }
  0x11   :  { %s1102_s0 = smov 0   ;;  %s1104_s20 = smov 0  }
  0x12   :  { %s1106_s21 = smov 0   ;;  %s1108_s22 = smov 0  }
  0x13 LB: > { %1297 = sst [smem:[#allocation10_spill]] %s1022_s0  ;;  %s854_s23 = sadd.s32 4294967295, %s1034_s22   ;;  %s1034_s22 = sphi %s1108_s22, %s29_s22   ;;  %s1030_s21 = sphi %s1106_s21, %s1308_s21   ;;  %s1026_s20 = sphi %s1104_s20, %s1307_s20   ;;  %s1022_s0 = sphi %s1102_s0, %s1306_s0   ;;  %s1018_s19 = sphi %s1100_s19, %s1310_s19   ;;  %s1014_s18 = sphi %s1098_s18, %s1309_s18  }
  0x14   : > { %1298 = sst [smem:[#allocation11_spill]] %s1030_s21  ;;  %s855_s24 = sadd.s32 4294967294, %s1034_s22  }
  0x15   : > { %s48_s25 = sadd.s32 1, %s1030_s21  ;;  %s264_s26 = sadd.s32 1, %s1022_s0 }
  0x16   : > { %p50_p5 = scmp.ge.s32.totalorder %s48_s25, 2  ;;  %p274_p6 = scmp.ne.s32.totalorder %s1022_s0, %s1018_s19 }
  0x17   : > { %p275_p7 = scmp.eq.s32.totalorder %s854_s23, 1  ;;  %p280_p8 = scmp.ne.s32.totalorder %s1018_s19, %s1014_s18 }
  0x18   : > { %s1312_s25 = smov (%p50_p5, %s48_s25), 0  ;;  %p281_p10 = scmp.eq.s32.totalorder %s855_s24, 1 }
  0x19   : > { %1299 = sst [smem:[#allocation12_spill]] %s1312_s25  ;;  %p1136_p9 = por %p275_p7, %p274_p6 }
  0x1a   : > { %s259_s28 = ssub.s32 %s1030_s21, %s1312_s25  ;;  %p858_p11 = scmp.ge.s32.totalorder %s1034_s22, 1 }
  0x1b   : > { %p262_p12 = scmp.eq.s32.totalorder %s259_s28, 0  ;;  %p1143_p13 = por %p281_p10, %p280_p8 }
  0x1c   : > { %p350_p0 = scmp.lt.s32.totalorder %s1034_s22, 3 }
  0x1d   : > { %s1301_s29 = scalar_select %p1143_p13, 1, 0 }
  0x1e   : > { %s1149_s30 = scalar_select %p262_p12, %s1022_s0, %s264_s26  }
  0x1f   : > { %1302 = sst [smem:[#allocation13_spill]] %s1301_s29  ;;  %p351_p1 = pnand %p858_p11, %p350_p0 }
  0x20   : > { %1303 = sst [smem:[#allocation14_spill]] %s1149_s30  ;;  %p403_p2 = scmp.lt.s32.totalorder (!%p351_p1), %s1026_s20, 1  ;;  %v1037_v0 = vmov (!%p351_p1), 0   ;;  %v436_v1 = vld [vmem:[%s1288_s6] sm:$0xff] (!%p351_p1)  ;;  %v437_v2 = vld [vmem:[%s1288_s6 + $0x8] sm:$0xff] (!%p351_p1)  ;;  %v438_v3 = vld [vmem:[%s1288_s6 + $0x10] sm:$0xff] (!%p351_p1) }
  0x21   : > { %354 = sbr.rel (%p351_p1) target bundleno = 899 (0x383), region = 56  ;;  %s1151_s11 = sshll.u32 (!%p351_p1), %s1026_s20, 7  ;;  %555 = vmatprep.mubr.bf16.mxu0 (!%p351_p1), %v1037_v0  ;;  %938 = vset.pattern.permute.xlu0 (!%p351_p1), %v1037_v0  ;;  %v439_v4 = vld [vmem:[%s1288_s6 + $0x18] sm:$0xff] (!%p351_p1)  ;;  %v445_v5 = vld [vmem:[%s1289_s7] sm:$0xff] (!%p351_p1)  ;;  %v446_v8 = vld [vmem:[%s1289_s7 + $0x8] sm:$0xff] (!%p351_p1)  ;;  %vm434_vm0 = vcmask (!%p351_p1), 7168  }
  0x22   : > { %s427_s12 = sld [smem:[#allocation5 + %s1151_s11]] (!%p351_p1)  ;;  %s428_s13 = sadd.s32 (!%p351_p1), 1, %s1151_s11  ;;  %939 = vset.pattern.permute.xlu1 (!%p351_p1), %v1037_v0  ;;  %631 = vmatprep.mubr.bf16.mxu1 (!%p351_p1), %v1037_v0  ;;  %v447_v9 = vld [vmem:[%s1289_s7 + $0x10] sm:$0xff] (!%p351_p1)  ;;  %v448_v10 = vld [vmem:[%s1289_s7 + $0x18] sm:$0xff] (!%p351_p1)  ;;  %vm516_vm1 = vcmask (!%p351_p1), 1041408   ;;  %v940_v30 = vld [vmem:[%s1285_s3] sm:$0xff] (!%p351_p1)  }
  0x23   : > { %s1155_s14 = sld [smem:[#allocation5 + %s428_s13]] (!%p351_p1)  ;;  %vm509_vm2 = vcmask (!%p351_p1), 31744   ;;  %v589_v35 = vld [vmem:[%s1290_s8] sm:$0xf] (!%p351_p1)  ;;  %v941_v37 = vld [vmem:[%s1285_s3 + $0x8] sm:$0xff] (!%p351_p1)   ;;  %vm595_vm3 = vcmask (!%p351_p1), 261120  }
  0x24   : > { %v641_v36 = vld [vmem:[%s1291_s9] sm:$0xf] (!%p351_p1)  ;;  %vm701_vm4 = vcmask (!%p351_p1), 1043456   ;;  %vm708_vm5 = vcmask (!%p351_p1), 3072   ;;  %s398_s21 = sand.u32 (!%p351_p1), 1, %s1018_s19  }
  0x25   : > { %s859_s30 = sshll.u32 (!%p351_p1), %s398_s21, 3 }
  0x26   : > { %s400_s0 = scalar_lea.vmem (!%p351_p1), [#allocation6], %s859_s30 }
  0x27   : > { %s759_s28 = sshll.u32 (!%p351_p1), %s400_s0, 4  ;;  %s1231_s28 = int_to_ptr.vmem [resolvable:$true] %s759_s28 }
  0x28   : > { %s1314_s20 = smov (!%p403_p2, %s1026_s20), 1  ;;  %v440_v7 = vstv %s427_s12  ;;  %s954_s13 = scalar_lea.vmem %s1231_s28, 128 }
  0x29   : > { %s876_s15 = sshll.u32 %s1314_s20, 3  ;;  %v441_v12 = vmul.f32 %v440_v7, %v436_v1  ;;  %v442_v13 = vmul.f32 %v440_v7, %v437_v2  ;;  %v443_v14 = vmul.f32 %v440_v7, %v438_v3  ;;  %v444_v15 = vmul.f32 %v440_v7, %v439_v4  ;;  %p955_p3 = scmp.ne.s32.totalorder %s1231_s28, %s954_s13 }
  0x2a   : > { %s410_s26 = scalar_lea.vmem %s1283_s1, %s876_s15  ;;  %s422_s25 = scalar_lea.vmem %s1284_s2, %s876_s15  ;;  %v463_v18 = vstv %s1155_s14 }
  0x2b   : > { %v1182_v6 = vld [vmem:[%s410_s26] sm:$0xff]  ;;  %v449_v19 = vadd.f32 %v445_v5, %v441_v12  ;;  %v450_v20 = vadd.f32 %v446_v8, %v442_v13  ;;  %v451_v21 = vadd.f32 %v447_v9, %v443_v14  ;;  %v452_v22 = vadd.f32 %v448_v10, %v444_v15  ;;  %s1237_s14 = scalar_lea.hbm %s1292_s10, %s1151_s11  ;;  %s745_s26 = scalar_lea.sflag [#allocation7], %s398_s21 }
  0x2c   : > { %v459_v11 = vsub.f32 0.0, %v1182_v6  ;;  %v1194_v16 = vld [vmem:[%s422_s25] sm:$0xff]  ;;  %v1038_v10 = vmov 0.0   ;;  %p956_p4 = pnand %p955_p3, %p1136_p9  ;;  %s1039_s20 = smov [#allocation6]  }
  0x2d   : > { %v464_v24 = vmul.f32 %v463_v18, %v1194_v16  ;;  %453 = vst.msk [vmem:[#allocation3] sm:$0xff] %vm434_vm0, %v449_v19  ;;  %454 = vst.msk [vmem:[#allocation3 + $0x8] sm:$0xff] %vm434_vm0, %v450_v20  ;;  %v588_v8 = vld [vmem:[%s1286_s4] sm:$0x3]  ;;  %s958_s16 = sshll.u32 %s1039_s20, 4  ;;  %s959_s16 = int_to_ptr.vmem [resolvable:$false] %s958_s16 }
  0x2e   : > { %v461_v17 = vmul.f32 %v459_v11, %v440_v7  ;;  %455 = vst.msk [vmem:[#allocation3 + $0x10] sm:$0xff] %vm434_vm0, %v451_v21  ;;  %456 = vst.msk [vmem:[#allocation3 + $0x18] sm:$0xff] %vm434_vm0, %v452_v22  ;;  %v640_v9 = vld [vmem:[%s1287_s5] sm:$0x3]  ;;  %p957_p5 = pneg %p956_p4  ;;  %s960_s17 = scalar_lea.vmem %s959_s16, 256 }
  0x2f   : > { %435 = vst.msk [vmem:[#allocation2] sm:$0xff] %vm434_vm0, %v1038_v10  ;;  %p961_p6 = scmp.lt.s32.totalorder %s1231_s28, %s959_s16  ;;  %p962_p7 = scmp.lt.s32.totalorder %s960_s17, %s954_s13 }
  0x30   : > { %v462_v23 = vadd.f32 %v461_v17, %v1182_v6 }
  0x31   : > { %p963_p8 = por %p962_p7, %p961_p6 }
  0x32   : > { %v465_v25 = vadd.f32 %v464_v24, %v462_v23 }
  0x33   : > { %p964_p10 = pnand %p963_p8, %p957_p5 }
  0x34   : > { %v471_v26 = vcombine.high %v465_v25, %v465_v25  ;;  %v473_v27 = vpack.c.bf16 %v465_v25, %v465_v25  ;;  %v475_v31 = vld [vmem:[#allocation3] sm:$0xff]  ;;  %v476_v33 = vld [vmem:[#allocation3 + $0x8] sm:$0xff] }
  0x35   : > { %v477_v32 = vld [vmem:[#allocation3 + $0x10] sm:$0xff]  ;;  %481 = vperm.xlu0 %938, %v475_v31   ;;  %v478_v34 = vld [vmem:[#allocation3 + $0x18] sm:$0xff] }
  0x36   : > { %v474_v28 = vpack.c.bf16 %v471_v26, %v471_v26  ;;  %v518_v29 = vsel %vm516_vm1, %v473_v27, 0  ;;  %491 = vperm.xlu1 %939, %v477_v32  }
  0x38   : > { %867 = vmatprep.subr.msk.bf16.mxu0 %vm516_vm1, %v474_v28 }
  0x39   : > { %524 = vmatpush1.bf16.msra.mxu0 %v518_v29  ;;  %486 = vperm.xlu0 %938, %v476_v33  }
  0x3a   : > { %496 = vperm.xlu1 %939, %v478_v34  }
  0x3c   : > { %868 = vmatmul.mubr.msk.bf16.vlgmr.msra.gmra.mrb[0].mxu0 %vm509_vm2, %v940_v30 }
  0x3d   : > { %565 = vmatprep.mubr.bf16.mxu0 %v1037_v0  ;;  %592 = vperm.xlu0 %938, %v589_v35  }
  0x3e   : > { %644 = vperm.xlu1 %939, %v641_v36  }
  0x44   : > { %869 = vmatmul.mubr.msk.bf16.gmra.mrb[4].mxu0 %vm509_vm2, %v941_v37 }
  0xb4   : > { %v482_v38 = vpop.permute.xlu0 %481 }
  0xb5   : > { %v492_v47 = vpop.permute.xlu1 %491 }
  0xb8   : > { %v487_v42 = vpop.permute.xlu0 %486 }
  0xb9   : > { %v497_v58 = vpop.permute.xlu1 %496 }
  0xbc   : > { %v593_v12 = vpop.permute.xlu0 %592 }
  0xbd   : > { %v645_v21 = vpop.permute.xlu1 %644 }
 0x10f   : > { %v557_v39 = vpop.f32.mrb[0].mxu0 }
 0x110   : > { %v558_v40 = vadd.f32 %v557_v39, %v482_v38  ;;  %v559_v41 = vpop.f32.mrb[1].mxu0 }
 0x111   : > { %v560_v43 = vadd.f32 %v559_v41, %v482_v38  ;;  %v561_v44 = vpop.f32.mrb[2].mxu0  ;;  %v691_v38 = vld [vmem:[#allocation2] sm:$0xf]  ;;  %v710_v41 = vld [vmem:[#allocation2 + $0x4] sm:$0xf] }
 0x112   : > { %v562_v45 = vadd.f32 %v561_v44, %v487_v42  ;;  %v563_v46 = vpop.f32.mrb[3].mxu0  ;;  %v576_v49 = vmax.f32 %v558_v40, 0.0 }
 0x113   : > { %v564_v48 = vadd.f32 %v563_v46, %v487_v42  ;;  %v577_v51 = vmax.f32 %v560_v43, 0.0 }
 0x114   : > { %v578_v50 = vmax.f32 %v562_v45, 0.0 }
 0x115   : > { %v579_v52 = vmax.f32 %v564_v48, 0.0 }
 0x116   : > { %v584_v53 = vpack.c.bf16 %v578_v50, %v576_v49 }
 0x117   : > { %v567_v54 = vpop.f32.mrb[4].mxu0  ;;  %v585_v55 = vpack.c.bf16 %v579_v52, %v577_v51 }
 0x118   : > { %v568_v56 = vadd.f32 %v567_v54, %v492_v47  ;;  %v569_v57 = vpop.f32.mrb[5].mxu0 }
 0x119   : > { %v570_v59 = vadd.f32 %v569_v57, %v492_v47  ;;  %v571_v60 = vpop.f32.mrb[6].mxu0  ;;  %599 = vmatprep.subr.bf16.mxu1 %v585_v55 }
 0x11a   : > { %v572_v61 = vadd.f32 %v571_v60, %v497_v58  ;;  %v573_v62 = vpop.f32.mrb[7].mxu0  ;;  %600 = vmatpush1.bf16.msra.mxu1 %v584_v53  ;;  %v580_v1 = vmax.f32 %v568_v56, 0.0 }
 0x11b   : > { %v574_v63 = vadd.f32 %v573_v62, %v497_v58  ;;  %v581_v3 = vmax.f32 %v570_v59, 0.0 }
 0x11c   : > { %v582_v2 = vmax.f32 %v572_v61, 0.0 }
 0x11d   : > { %v583_v4 = vmax.f32 %v574_v63, 0.0 }
 0x11e   : > { %v586_v5 = vpack.c.bf16 %v582_v2, %v580_v1 }
 0x11f   : > { %v587_v7 = vpack.c.bf16 %v583_v4, %v581_v3 }
 0x121   : > { %601 = vmatprep.subr.bf16.mxu1 %v587_v7 }
 0x122   : > { %602 = vmatpush1.bf16.msra.mxu1 %v586_v5 }
 0x123   : > { %650 = vmatprep.subr.bf16.mxu1 %v585_v55 }
 0x125   : > { %870 = vmatmul.mubr.msk.bf16.vlgmr.msra.gmra.mrb[0].mxu1 %vm595_vm3, %v588_v8 }
 0x126   : > { %651 = vmatpush1.bf16.msra.mxu1 %v584_v53  ;;  %682 = vmatprep.mubr.bf16.mxu1 %v1037_v0 }
 0x127   : > { %652 = vmatprep.subr.bf16.mxu1 %v587_v7 }
 0x12a   : > { %653 = vmatpush1.bf16.msra.mxu1 %v586_v5 }
 0x12d   : > { %871 = vmatmul.mubr.msk.bf16.vlgmr.msra.gmra.mrb[4].mxu1 %vm595_vm3, %v640_v9 }
 0x1f8   : > { %v633_v13 = vpop.f32.mrb[0].mxu1 }
 0x1f9   : > { %v634_v14 = vadd.f32 %v633_v13, %v593_v12  ;;  %v635_v15 = vpop.f32.mrb[1].mxu1 }
 0x1fa   : > { %v636_v17 = vadd.f32 %v635_v15, %v593_v12  ;;  %v637_v18 = vpop.f32.mrb[2].mxu1 }
 0x1fb   : > { %v638_v19 = vpop.f32.mrb[3].mxu1 }
 0x1fc   : > { %v694_v20 = vcombine.low %v634_v14, %v636_v17 }
 0x1fe   : > { %v696_v0 = vsub.f32 %v459_v11, %v694_v20 }
 0x200   : > { %v684_v22 = vpop.f32.mrb[4].mxu1  ;;  %v697_v23 = vmul.f32 %v696_v0, %v696_v0 }
 0x201   : > { %v685_v24 = vadd.f32 %v684_v22, %v645_v21  ;;  %v686_v25 = vpop.f32.mrb[5].mxu1 }
 0x202   : > { %v687_v26 = vadd.f32 %v686_v25, %v645_v21  ;;  %v688_v27 = vpop.f32.mrb[6].mxu1  ;;  %v699_v28 = vcombine.high %v697_v23, %v697_v23  ;;  %v702_v31 = vsel %vm701_vm4, %v697_v23, 0.0 }
 0x203   : > { %v689_v29 = vpop.f32.mrb[7].mxu1 }
 0x204   : > { %v713_v30 = vcombine.low %v685_v24, %v687_v26  ;;  %v703_v32 = vsel %vm701_vm4, %v699_v28, 0.0 }
 0x205   : > { %v704_v33 = vadd.f32 %v703_v32, %v702_v31 }
 0x206   : > { %v715_v34 = vsub.f32 %v1194_v16, %v713_v30 }
 0x207   : > { %705 = vadd.xlane.f32.xlu0 %v704_v33 }
 0x208   : > { %v716_v35 = vmul.f32 %v715_v34, %v715_v34 }
 0x20a   : > { %v718_v6 = vcombine.high %v716_v35, %v716_v35  ;;  %v720_v11 = vsel %vm701_vm4, %v716_v35, 0.0 }
 0x20c   : > { %v721_v36 = vsel %vm701_vm4, %v718_v6, 0.0 }
 0x20d   : > { %v722_v37 = vadd.f32 %v721_v36, %v720_v11 }
 0x20f   : > { %723 = vadd.xlane.f32.xlu1 %v722_v37 }
 0x294   : > { %v706_v39 = vpop.xlane.xlu0 %705 }
 0x295   : > { %v707_v40 = vadd.f32 %v706_v39, %v691_v38 }
 0x297   : > { %709 = vst.msk [vmem:[#allocation2] sm:$0xf] %vm708_vm5, %v707_v40 }
 0x29c   : > { %v724_v42 = vpop.xlane.xlu1 %723 }
 0x29d   : > { %v725_v43 = vadd.f32 %v724_v42, %v710_v41 }
 0x29f   : > { %726 = vst.msk [vmem:[#allocation2 + $0x4] sm:$0xf] %vm708_vm5, %v725_v43 }
 0x2a6   : > { %v730_v44 = vld [vmem:[#allocation2] sm:$0xff] }
 0x2a7   : > { %v732_v16 = vsel %vm434_vm0, %v730_v44, 0.0 }
 0x2a8   : > { %733 = vadd.xlane.f32.xlu0 %v732_v16 }
 0x335   : > { %v734_v45 = vpop.xlane.xlu0 %733 }
 0x336   : > { %v735_v46 = vrot.slane %v734_v45, 4 }
 0x338   : > { %v736_v47 = vadd.f32 %v735_v46, %v734_v45 }
 0x33a   : > { %v737_v48 = vrot.slane %v736_v47, 2 }
 0x33c   : > { %v738_v49 = vadd.f32 %v737_v48, %v736_v47 }
 0x33e   : > { %v739_v50 = vrot.slane %v738_v49, 1 }
 0x340   : > { %v740_v51 = vadd.f32 %v739_v50, %v738_v49 }
 0x342   : > { %878 = vpush %v740_v51 }
 0x373   : > { %s879_s25 = spop %878 }
 0x374   : > { %v742_v52 = vstv %s879_s25 }
 0x375   : > { %743 = vst [vmem:[%s400_s0] sm:$0xff] %v742_v52 }
 0x376   : > { %967 = shalt.err (!%p964_p10)
}
 0x377   : > { %s968_s11 = scalar_lea.hbm %s1237_s14, 128  ;;  %s972_s24 = scalar_lea.hbm %s1292_s10, 256 }
 0x378   : > { %p969_p11 = scmp.ne.s32.totalorder %s1237_s14, %s968_s11  ;;  %p973_p1 = scmp.lt.u32.totalorder %s1237_s14, %s1292_s10 }
 0x379   : > { %p974_p2 = scmp.lt.u32.totalorder %s972_s24, %s968_s11  ;;  %p976_p4 = scmp.lt.u32.totalorder %s968_s11, %s1237_s14 }
 0x37a   : > { %p970_p12 = pnand %p969_p11, %p1136_p9 }
 0x37b   : > { %p975_p3 = por %p974_p2, %p973_p1 }
 0x37c   : > { %p971_p0 = pneg %p970_p12 }
 0x37d   : > { %p977_p5 = por %p976_p4, %p975_p3 }
 0x37f   : > { %p978_p6 = pnand %p977_p5, %p971_p0 }
 0x381   : > { %981 = shalt.err (!%p978_p6)
}
 0x382   : > { %880 = dma.vmem_to_hbm [thread:$0]  (%p1136_p9), %s1231_s28, 128, %s1237_s14, %s745_s26  }
 0x383 PF: > { %p886_p7 = scmp.ge.s32.totalorder %s1034_s22, 2  ;;  %s771_s25 = sand.u32 1, %s1014_s18  }
 0x384   : > { %s772_s29 = scalar_lea.sflag [#allocation7], %s771_s25 }
 0x385   : > { %p883_p8 = pnand %p886_p7, %p1143_p13 }
 0x387   : > { %1009 = dma.done.wait (!%p883_p8), %s772_s29, 128  }
 0x388   : > { %1011 = vsyncadd (!%p883_p8), %s772_s29, 4294967168  ;;  %s29_s22 = sadd.s32 1, %s1034_s22   ;;  %s1305_s12 = sld [smem:[#allocation10_spill]] }
 0x389   : > { %p26_p10 = scmp.ge.s32.totalorder %s29_s22, 4   ;;  %s1306_s0 = sld [smem:[#allocation14_spill]] }
 0x38a   : > { %s1307_s20 = sld [smem:[#allocation11_spill]]  ;;  %s1308_s21 = sld [smem:[#allocation12_spill]] }
 0x38b   : > { %s1309_s18 = smov %s1018_s19  ;;  %28 = sbr.rel (!%p26_p10) target bundleno = 19 (0x13), region = 102 }
 0x38e   : > { %s1310_s19 = smov %s1305_s12 }
 0x392   :  { %777 = vsyncpa [#allocation7], 1 }
 0x393   :  { %779 = vsyncpa [#allocation7 + $0x1], 1 }

</bundles_post_ra>
